<compile_context>
chip_gen: v6e
topology: v6e:2x2x1
jax: 0.10.0
libtpu: 0.0.40
codegen_flags: <defaults>
</compile_context>

<pallas_src>
import math
import numpy as np
import jax
import jax.numpy as jnp
from jax.experimental import pallas as pl
from jax.experimental.pallas import tpu as pltpu


OUT_PAD = 128   # lane-dense padded output width (true width = num_nodes)


# ----------------------------- Pallas kernel ------------------------------ #
def crossgnn_kernel(xm_ref, e_ref, bs_ref, atb_ref, atb2_ref,
                    wt0_ref, wt1_ref, wt2_ref, bt_ref,
                    wnf_ref, bn_ref, v1_ref, v2_ref, bl_ref, out_ref):
    f32, bf16 = jnp.float32, jnp.bfloat16
    Bb, L, C = xm_ref.shape
    M = Bb * L

    # expand_channel: Linear(1, d_model)  ==  xm2d @ kron(I_C, w_start) + b
    xm2d = xm_ref[...].reshape(M, C)                       # bf16 (pre-cast on host)
    x = jnp.dot(xm2d, e_ref[...], preferred_element_type=f32) + bs_ref[...]
    x_res_bf = x.astype(bf16)                              # residual for final head, cast early

    # ------- time GCN (gnn_type='time', order=2), batch folded into M -------
    # block-diagonal kron(I_Bb, A_time^T) / its square: one MXU-native left
    # matmul per order instead of 2*Bb tiny K=L matmuls + axis-0 concats.
    x1 = jnp.dot(atb_ref[...], x_res_bf, preferred_element_type=f32)
    x2 = jnp.dot(atb2_ref[...], x_res_bf, preferred_element_type=f32)
    # fused MLP over cat([x, x1, x2], -1) as three accumulating [F, F] matmuls.
    h = (jnp.dot(x_res_bf, wt0_ref[...], preferred_element_type=f32)
         + jnp.dot(x1.astype(bf16), wt1_ref[...], preferred_element_type=f32)
         + jnp.dot(x2.astype(bf16), wt2_ref[...], preferred_element_type=f32)
         + bt_ref[...])
    x = jax.nn.gelu(h, approximate=True) + x               # tanh GELU -> EUP slot

    # ------- node GCN (gnn_type='nodes', order=2), folded to ONE matmul -----
    x_bf = x.astype(bf16)
    h2 = jnp.dot(x_bf, wnf_ref[...], preferred_element_type=f32) + bn_ref[...]
    x = jax.nn.gelu(h2, approximate=True) + x

    # ------- final Linear(2*d_model, 1) as two lane-dense [F,128] matmuls ---
    out = (jnp.dot(x_res_bf, v1_ref[...], preferred_element_type=f32)
           + jnp.dot(x.astype(bf16), v2_ref[...], preferred_element_type=f32)
           + bl_ref[0, 0])
    # NOTE: padded lanes C..127 carry only the scalar bias; host slices them off.
    # TODO(synk): dropout is a no-op here (eval mode); training-mode RNG dropout not implemented.
    out_ref[...] = out.astype(out_ref.dtype).reshape(Bb, L, out_ref.shape[-1])


def pick_batch_block(B, L, *, target_rows=512, min_grid=2):
    """Largest divisor of B giving M = Bb*L <= target_rows MXU rows; on dual-TC
    parts (v7x) keep grid >= 2 when that still leaves >= 128 rows per step."""
    divisors = [d for d in range(1, B + 1) if B % d == 0]
    fitting = [d for d in divisors if d * L <= target_rows] or [1]
    bb = max(fitting)
    if B // bb < min_grid:
        alt = [d for d in fitting if B // d >= min_grid and d * L >= 128]
        if alt:
            bb = max(alt)
    return bb


def run_pallas(xm, operands, *, batch_block=None):
    B, L, C = xm.shape
    (E, bs_row, At, At2, Wt0k, Wt1k, Wt2k, bt_row,
     Wn_fold, bn_row, V1_pad, V2_pad, bl_smem) = operands

    if batch_block is None:
        batch_block = pick_batch_block(B, L)
    Bb = batch_block
    # TODO(synk): no remainder-tile handling; B must divide evenly by the batch block.
    assert B % Bb == 0
    grid = (B // Bb,)

    f32, bf16 = jnp.float32, jnp.bfloat16
    eyeB = jnp.eye(Bb, dtype=f32)
    At_blk = jnp.kron(eyeB, At).astype(bf16)     # [M, M] grid-invariant block-diag
    At2_blk = jnp.kron(eyeB, At2).astype(bf16)
    xm_bf = xm.astype(bf16)                      # halve the only per-step-varying DMA

    def inv(shape):
        zeros = (0,) * len(shape)
        return pl.BlockSpec(shape, lambda i, _z=zeros: _z)   # grid-invariant, no re-DMA

    in_specs = [
        pl.BlockSpec((Bb, L, C), lambda i: (i, 0, 0)),        # xm block (per-step)
        inv(E.shape), inv(bs_row.shape),                      # expand_channel
        inv(At_blk.shape), inv(At2_blk.shape),                # time conv (block-diag)
        inv(Wt0k.shape), inv(Wt1k.shape), inv(Wt2k.shape), inv(bt_row.shape),
        inv(Wn_fold.shape), inv(bn_row.shape),                # folded node GCN
        inv(V1_pad.shape), inv(V2_pad.shape),                 # final head (split)
        pl.BlockSpec(memory_space=pltpu.MemorySpace.SMEM),    # scalar final bias
    ]
    out_spec = pl.BlockSpec((Bb, L, OUT_PAD), lambda i: (i, 0, 0))

    return pl.pallas_call(
        crossgnn_kernel,
        out_shape=jax.ShapeDtypeStruct((B, L, OUT_PAD), bf16),   # bf16 writeback
        grid=grid,
        in_specs=in_specs,
        out_specs=out_spec,
        compiler_params=pltpu.CompilerParams(dimension_semantics=("parallel",)),
    )(xm_bf, E, bs_row, At_blk, At2_blk, Wt0k, Wt1k, Wt2k, bt_row,
      Wn_fold, bn_row, V1_pad, V2_pad, bl_smem)


# ------------------- host operand packing (layout/param prep) ------------- #
def build_kernel_operands(A_time, A_node, W_start, b_start, Wt, bt, Wn, bn, Wl, bl):
    hp = jax.lax.Precision.HIGHEST
    f32, bf16 = jnp.float32, jnp.bfloat16
    C = A_node.shape[0]
    D = W_start.shape[0]
    F = C * D
    eyeC = jnp.eye(C, dtype=f32)

    # expand_channel Linear(1, D) as one [C, F] matmul (replaces host-side repeat)
    E = jnp.kron(eyeC, W_start[:, 0][None, :]).astype(bf16)            # [C, F]
    bs_row = jnp.tile(b_start, C)[None, :].astype(f32)                 # [1, F]

    # time conv operands (left-multiply form); square precomputed (no serial chain)
    At = A_time.T                                                       # [L, L] f32
    At2 = jnp.matmul(At, At, precision=hp)

    # time MLP split into three [F, F] blocks (accumulating matmuls in kernel)
    WtT = Wt.T                                                          # [3D, D]
    Wt0k = jnp.kron(eyeC, WtT[0 * D:1 * D, :]).astype(bf16)
    Wt1k = jnp.kron(eyeC, WtT[1 * D:2 * D, :]).astype(bf16)
    Wt2k = jnp.kron(eyeC, WtT[2 * D:3 * D, :]).astype(bf16)
    bt_row = jnp.tile(bt, C)[None, :].astype(f32)

    # node GCN folded on host into a single [F, F] weight (f32 fold, one bf16 cast):
    #   cat([x, x@Kn, x@Kn^2], -1) @ Wn_stack
    #     == x @ (kron(I_C, Wn0^T) + kron(A_node, Wn1^T) + kron(A_node^2, Wn2^T))
    # TODO(synk): for large F = C*D switch these dense kron weights to per-node
    # block matmuls and re-check grid-invariant weight bytes vs v7x's 64 MiB VMEM.
    WnT = Wn.T                                                          # [3D, D]
    A2 = jnp.matmul(A_node, A_node, precision=hp)
    Wn_fold = (jnp.kron(eyeC, WnT[0 * D:1 * D, :])
               + jnp.kron(A_node, WnT[1 * D:2 * D, :])
               + jnp.kron(A2, WnT[2 * D:3 * D, :])).astype(bf16)        # [F, F]
    bn_row = jnp.tile(bn, C)[None, :].astype(f32)

    # final head split into two lane-dense (padded) [F, 128] matmuls
    V1 = jnp.kron(eyeC, Wl[0, :D][:, None])                             # [F, C]
    V2 = jnp.kron(eyeC, Wl[0, D:][:, None])                             # [F, C]
    V1_pad = jnp.zeros((F, OUT_PAD), f32).at[:, :C].set(V1).astype(bf16)
    V2_pad = jnp.zeros((F, OUT_PAD), f32).at[:, :C].set(V2).astype(bf16)
    bl_smem = bl.reshape(1, 1).astype(f32)                              # scalar bias -> SMEM

    return (E, bs_row, At, At2, Wt0k, Wt1k, Wt2k, bt_row,
            Wn_fold, bn_row, V1_pad, V2_pad, bl_smem)


# ----------------------------- host glue ---------------------------------- #
def fft_for_period(x_np, k, seq_len):
    xf = np.fft.rfft(x_np, axis=1)
    freq = np.abs(xf).mean(axis=0).mean(axis=-1)
    freq[0] = -np.inf
    top_list = np.argsort(-freq, kind="stable")[:k]
    periods = [1] + [int(math.ceil(seq_len / int(t))) for t in top_list]
    return periods


def multi_scale(x, periods, return_len):
    B, S, C = x.shape
    outs = []
    for p in periods:
        n = S // p
        if n > 0:
            outs.append(jnp.mean(x[:, : n * p, :].reshape(B, n, p, C), axis=2))
    xm = jnp.concatenate(outs, axis=1)
    cur = xm.shape[1]
    if cur < return_len:
        xm = jnp.concatenate([xm, jnp.zeros((B, return_len - cur, C), x.dtype)], axis=1)
    elif cur > return_len:
        xm = xm[:, :return_len, :]
    return xm


def get_time_adj(timevec1, timevec2, periods, S, L, tk):
    adj = jax.nn.relu(timevec1 @ timevec2)                # [L, L]
    mask_cols = []
    start = 0
    for p in periods:
        ls = S // p
        end = start + ls
        if end > L:
            end = L
            ls = L - start
        if ls > 0:
            kp = tk // p
            kp = max(kp, 5)
            kp = min(kp, ls)
            seg = adj[:, start:end]
            thr = jnp.sort(seg, axis=-1)[:, ls - kp][:, None]   # kp-th largest per row
            mask_cols.append(seg < thr)
        start = end
        if start == L:
            break
    mask = jnp.concatenate(mask_cols, axis=1)
    if start < L:
        mask = jnp.concatenate([mask, jnp.zeros((L, L - start), dtype=bool)], axis=1)
    idx = np.arange(L - 1)
    mask = mask.at[idx, idx + 1].set(False)               # add_adjecent_connect
    mask = mask.at[idx + 1, idx].set(False)
    logits = jnp.where(mask, -jnp.inf, adj)
    # guard: a fully-masked column would softmax to NaN (host-glue robustness)
    logits = jnp.where(jnp.all(mask, axis=0, keepdims=True), 0.0, logits)
    adj = jax.nn.softmax(logits, axis=0)
    return adj


def get_var_adj(nodevec1, nodevec2):
    adj = jax.nn.relu(nodevec1 @ nodevec2)                # [C, C]
    C = adj.shape[0]
    k = min(3, C)
    s = jnp.sort(adj, axis=-1)
    kth_largest = s[:, C - k][:, None]
    kth_smallest = s[:, k - 1][:, None]
    mask_pos = adj >= kth_largest
    mask_neg = adj <= kth_smallest
    pos = mask_pos * jax.nn.softmax(jnp.where(mask_pos, adj, -jnp.inf), axis=-1)
    neg = -1.0 * mask_neg * jax.nn.softmax(
        jnp.where(mask_neg, 1.0 / (adj + 1.0), -jnp.inf), axis=-1)
    return pos + neg


def reference_forward(xm, A_time, A_node, Ws, bs, Wt, bt, Wn, bn, Wl, bl, S):
    hp = jax.lax.Precision.HIGHEST
    x = xm[..., None] * Ws[:, 0] + bs                     # [B, L, C, D]
    x_ = x

    def gcn_ref(z, conv, W, b):
        z1 = conv(z)
        z2 = conv(z1)
        h = jnp.concatenate([z, z1, z2], axis=-1)
        h = jnp.einsum("blcf,df->blcd", h, W, precision=hp) + b
        return jax.nn.gelu(h, approximate=False)

    x = gcn_ref(x, lambda z: jnp.einsum("btdc,tw->bwdc", z, A_time, precision=hp), Wt, bt) + x
    x = gcn_ref(x, lambda z: jnp.einsum("btdc,dw->btwc", z, A_node, precision=hp), Wn, bn) + x
    xc = jnp.concatenate([x_, x], axis=-1)
    y = jnp.einsum("blcf,f->blc", xc, Wl[0], precision=hp) + bl[0]
    return y[:, :S, :]


# --------------------------------- main ------------------------------------ #
if __name__ == "__main__":
    # small config consistent with the module
    B, S, C, D = 2, 16, 8, 16            # batch, seq_len, num_nodes, enc_dmodel
    L = 2 * S                            # self.seq_len = init_seq_len * 2
    tvech, nvech = 4, 4
    scale_number, tk = 4, 10

    key = jax.random.PRNGKey(0)
    ks = jax.random.split(key, 13)
    timevec1 = jax.random.normal(ks[0], (L, tvech), jnp.float32)
    timevec2 = jax.random.normal(ks[1], (tvech, L), jnp.float32)
    nodevec1 = jax.random.normal(ks[2], (C, nvech), jnp.float32)
    nodevec2 = jax.random.normal(ks[3], (nvech, C), jnp.float32)
    W_start = 0.1 * jax.random.normal(ks[4], (D, 1), jnp.float32)
    b_start = 0.1 * jax.random.normal(ks[5], (D,), jnp.float32)
    Wt = 0.1 * jax.random.normal(ks[6], (D, 3 * D), jnp.float32)      # tgcn.mlp
    bt = 0.1 * jax.random.normal(ks[7], (D,), jnp.float32)
    Wn = 0.1 * jax.random.normal(ks[8], (D, 3 * D), jnp.float32)      # gconv.mlp
    bn = 0.1 * jax.random.normal(ks[9], (D,), jnp.float32)
    Wl = 0.1 * jax.random.normal(ks[10], (1, 2 * D), jnp.float32)     # final Linear
    bl = 0.1 * jax.random.normal(ks[11], (1,), jnp.float32)
    x_in = jax.random.normal(ks[12], (B, S, C), jnp.float32)

    # ---- data-dependent graph-structure prep (host glue) ----
    periods = fft_for_period(np.asarray(x_in), scale_number, S)
    xm = multi_scale(x_in, periods, L)                    # [B, L, C]
    A_time = get_time_adj(timevec1, timevec2, periods, S, L, tk)   # [L, L]
    A_node = get_var_adj(nodevec1, nodevec2)                       # [C, C]

    # ---- kernel operand prep (layout / parameter packing only) ----
    operands = build_kernel_operands(A_time, A_node, W_start, b_start,
                                     Wt, bt, Wn, bn, Wl, bl)

    # ---- run Pallas kernel ----
    y_full = run_pallas(xm, operands)
    y_full = jax.block_until_ready(y_full)
    # slice lane padding + x[:, :init_seq_len, :], upcast bf16 writeback to f32
    y = y_full[:, :S, :C].astype(jnp.float32)

    # ---- correctness check against a plain-JAX reference of the torch math ----
    # (bf16 MXU operands / bf16 writeback with f32 accumulation + tanh GELU vs an
    #  f32 / exact-erf reference -> slightly loosened 2e-2 tolerance)
    y_ref = reference_forward(xm, A_time, A_node, W_start, b_start, Wt, bt, Wn, bn, Wl, bl, S)
    if not np.allclose(np.asarray(y), np.asarray(y_ref), rtol=2e-2, atol=2e-2):
        raise AssertionError("Pallas kernel output does not match reference")

    print("KERNEL_OK")
</pallas_src>

<mosaic_0001>
module attributes {stable_mosaic.version = 11 : i64} {
  func.func @crossgnn_kernel(%arg0: i32, %arg1: memref<2x32x8xbf16, #tpu.memory_space<vmem>>, %arg2: memref<8x128xbf16, #tpu.memory_space<vmem>>, %arg3: memref<1x128xf32, #tpu.memory_space<vmem>>, %arg4: memref<64x64xbf16, #tpu.memory_space<vmem>>, %arg5: memref<64x64xbf16, #tpu.memory_space<vmem>>, %arg6: memref<128x128xbf16, #tpu.memory_space<vmem>>, %arg7: memref<128x128xbf16, #tpu.memory_space<vmem>>, %arg8: memref<128x128xbf16, #tpu.memory_space<vmem>>, %arg9: memref<1x128xf32, #tpu.memory_space<vmem>>, %arg10: memref<128x128xbf16, #tpu.memory_space<vmem>>, %arg11: memref<1x128xf32, #tpu.memory_space<vmem>>, %arg12: memref<128x128xbf16, #tpu.memory_space<vmem>>, %arg13: memref<128x128xbf16, #tpu.memory_space<vmem>>, %arg14: memref<1x1xf32, #tpu.memory_space<smem>>, %arg15: memref<2x32x128xbf16, #tpu.memory_space<vmem>>) attributes {dimension_semantics = [#tpu.dimension_semantics<parallel>], iteration_bounds = array<i64: 1>, scalar_prefetch = 0 : i64, scratch_operands = 0 : i64, tpu.core_type = #tpu.core_type<tc>, window_params = [{transform_indices = @transform_0, window_bounds = array<i64: 2, 32, 8>}, {pipeline_mode = #tpu.pipeline_mode<synchronous>, transform_indices = @transform_1, window_bounds = array<i64: 8, 128>}, {pipeline_mode = #tpu.pipeline_mode<synchronous>, transform_indices = @transform_2, window_bounds = array<i64: 1, 128>}, {pipeline_mode = #tpu.pipeline_mode<synchronous>, transform_indices = @transform_3, window_bounds = array<i64: 64, 64>}, {pipeline_mode = #tpu.pipeline_mode<synchronous>, transform_indices = @transform_4, window_bounds = array<i64: 64, 64>}, {pipeline_mode = #tpu.pipeline_mode<synchronous>, transform_indices = @transform_5, window_bounds = array<i64: 128, 128>}, {pipeline_mode = #tpu.pipeline_mode<synchronous>, transform_indices = @transform_6, window_bounds = array<i64: 128, 128>}, {pipeline_mode = #tpu.pipeline_mode<synchronous>, transform_indices = @transform_7, window_bounds = array<i64: 128, 128>}, {pipeline_mode = #tpu.pipeline_mode<synchronous>, transform_indices = @transform_8, window_bounds = array<i64: 1, 128>}, {pipeline_mode = #tpu.pipeline_mode<synchronous>, transform_indices = @transform_9, window_bounds = array<i64: 128, 128>}, {pipeline_mode = #tpu.pipeline_mode<synchronous>, transform_indices = @transform_10, window_bounds = array<i64: 1, 128>}, {pipeline_mode = #tpu.pipeline_mode<synchronous>, transform_indices = @transform_11, window_bounds = array<i64: 128, 128>}, {pipeline_mode = #tpu.pipeline_mode<synchronous>, transform_indices = @transform_12, window_bounds = array<i64: 128, 128>}, {transform_indices = @transform_13, window_bounds = array<i64: 1, 1>}, {transform_indices = @transform_14, window_bounds = array<i64: 2, 32, 128>}]} {
    %c0 = arith.constant 0 : index
    %c0_0 = arith.constant 0 : index
    %c0_1 = arith.constant 0 : index
    %0 = vector.load %arg1[%c0, %c0_0, %c0_1] : memref<2x32x8xbf16, #tpu.memory_space<vmem>>, vector<2x32x8xbf16>
    %1 = vector.shape_cast %0 : vector<2x32x8xbf16> to vector<64x8xbf16>
    %c0_2 = arith.constant 0 : index
    %c0_3 = arith.constant 0 : index
    %2 = vector.load %arg2[%c0_2, %c0_3] : memref<8x128xbf16, #tpu.memory_space<vmem>>, vector<8x128xbf16>
    %cst = arith.constant dense<0.000000e+00> : vector<64x128xf32>
    %3 = tpu.matmul %1, %2, %cst {dimension_numbers = #tpu.dot_dimension_numbers<[1], [0], [0], [1], [0, 0, 1, 1], [], []>} : vector<64x8xbf16>, vector<8x128xbf16>, vector<64x128xf32> -> vector<64x128xf32>
    %c0_4 = arith.constant 0 : index
    %c0_5 = arith.constant 0 : index
    %4 = vector.load %arg3[%c0_4, %c0_5] : memref<1x128xf32, #tpu.memory_space<vmem>>, vector<1x128xf32>
    %5 = vector.broadcast %4 : vector<1x128xf32> to vector<64x128xf32>
    %6 = arith.addf %3, %5 : vector<64x128xf32>
    %7 = arith.truncf %6 : vector<64x128xf32> to vector<64x128xbf16>
    %c0_6 = arith.constant 0 : index
    %c0_7 = arith.constant 0 : index
    %8 = vector.load %arg4[%c0_6, %c0_7] : memref<64x64xbf16, #tpu.memory_space<vmem>>, vector<64x64xbf16>
    %cst_8 = arith.constant dense<0.000000e+00> : vector<64x128xf32>
    %9 = tpu.matmul %8, %7, %cst_8 {dimension_numbers = #tpu.dot_dimension_numbers<[1], [0], [0], [1], [0, 0, 1, 1], [], []>} : vector<64x64xbf16>, vector<64x128xbf16>, vector<64x128xf32> -> vector<64x128xf32>
    %c0_9 = arith.constant 0 : index
    %c0_10 = arith.constant 0 : index
    %10 = vector.load %arg5[%c0_9, %c0_10] : memref<64x64xbf16, #tpu.memory_space<vmem>>, vector<64x64xbf16>
    %cst_11 = arith.constant dense<0.000000e+00> : vector<64x128xf32>
    %11 = tpu.matmul %10, %7, %cst_11 {dimension_numbers = #tpu.dot_dimension_numbers<[1], [0], [0], [1], [0, 0, 1, 1], [], []>} : vector<64x64xbf16>, vector<64x128xbf16>, vector<64x128xf32> -> vector<64x128xf32>
    %c0_12 = arith.constant 0 : index
    %c0_13 = arith.constant 0 : index
    %12 = vector.load %arg6[%c0_12, %c0_13] : memref<128x128xbf16, #tpu.memory_space<vmem>>, vector<128x128xbf16>
    %cst_14 = arith.constant dense<0.000000e+00> : vector<64x128xf32>
    %13 = tpu.matmul %7, %12, %cst_14 {dimension_numbers = #tpu.dot_dimension_numbers<[1], [0], [0], [1], [0, 0, 1, 1], [], []>} : vector<64x128xbf16>, vector<128x128xbf16>, vector<64x128xf32> -> vector<64x128xf32>
    %14 = arith.truncf %9 : vector<64x128xf32> to vector<64x128xbf16>
    %c0_15 = arith.constant 0 : index
    %c0_16 = arith.constant 0 : index
    %15 = vector.load %arg7[%c0_15, %c0_16] : memref<128x128xbf16, #tpu.memory_space<vmem>>, vector<128x128xbf16>
    %cst_17 = arith.constant dense<0.000000e+00> : vector<64x128xf32>
    %16 = tpu.matmul %14, %15, %cst_17 {dimension_numbers = #tpu.dot_dimension_numbers<[1], [0], [0], [1], [0, 0, 1, 1], [], []>} : vector<64x128xbf16>, vector<128x128xbf16>, vector<64x128xf32> -> vector<64x128xf32>
    %17 = arith.addf %13, %16 : vector<64x128xf32>
    %18 = arith.truncf %11 : vector<64x128xf32> to vector<64x128xbf16>
    %c0_18 = arith.constant 0 : index
    %c0_19 = arith.constant 0 : index
    %19 = vector.load %arg8[%c0_18, %c0_19] : memref<128x128xbf16, #tpu.memory_space<vmem>>, vector<128x128xbf16>
    %cst_20 = arith.constant dense<0.000000e+00> : vector<64x128xf32>
    %20 = tpu.matmul %18, %19, %cst_20 {dimension_numbers = #tpu.dot_dimension_numbers<[1], [0], [0], [1], [0, 0, 1, 1], [], []>} : vector<64x128xbf16>, vector<128x128xbf16>, vector<64x128xf32> -> vector<64x128xf32>
    %21 = arith.addf %17, %20 : vector<64x128xf32>
    %c0_21 = arith.constant 0 : index
    %c0_22 = arith.constant 0 : index
    %22 = vector.load %arg9[%c0_21, %c0_22] : memref<1x128xf32, #tpu.memory_space<vmem>>, vector<1x128xf32>
    %23 = vector.broadcast %22 : vector<1x128xf32> to vector<64x128xf32>
    %24 = arith.addf %21, %23 : vector<64x128xf32>
    %25 = arith.mulf %24, %24 : vector<64x128xf32>
    %26 = arith.mulf %24, %25 : vector<64x128xf32>
    %cst_23 = arith.constant 4.471500e-02 : f32
    %27 = vector.broadcast %cst_23 : f32 to vector<64x128xf32>
    %28 = arith.mulf %27, %26 : vector<64x128xf32>
    %29 = arith.addf %24, %28 : vector<64x128xf32>
    %cst_24 = arith.constant 0.797884583 : f32
    %30 = vector.broadcast %cst_24 : f32 to vector<64x128xf32>
    %31 = arith.mulf %30, %29 : vector<64x128xf32>
    %32 = math.tanh %31 : vector<64x128xf32>
    %cst_25 = arith.constant 1.000000e+00 : f32
    %33 = vector.broadcast %cst_25 : f32 to vector<64x128xf32>
    %34 = arith.addf %33, %32 : vector<64x128xf32>
    %cst_26 = arith.constant 5.000000e-01 : f32
    %35 = vector.broadcast %cst_26 : f32 to vector<64x128xf32>
    %36 = arith.mulf %35, %34 : vector<64x128xf32>
    %37 = arith.mulf %24, %36 : vector<64x128xf32>
    %38 = arith.addf %37, %6 : vector<64x128xf32>
    %39 = arith.truncf %38 : vector<64x128xf32> to vector<64x128xbf16>
    %c0_27 = arith.constant 0 : index
    %c0_28 = arith.constant 0 : index
    %40 = vector.load %arg10[%c0_27, %c0_28] : memref<128x128xbf16, #tpu.memory_space<vmem>>, vector<128x128xbf16>
    %cst_29 = arith.constant dense<0.000000e+00> : vector<64x128xf32>
    %41 = tpu.matmul %39, %40, %cst_29 {dimension_numbers = #tpu.dot_dimension_numbers<[1], [0], [0], [1], [0, 0, 1, 1], [], []>} : vector<64x128xbf16>, vector<128x128xbf16>, vector<64x128xf32> -> vector<64x128xf32>
    %c0_30 = arith.constant 0 : index
    %c0_31 = arith.constant 0 : index
    %42 = vector.load %arg11[%c0_30, %c0_31] : memref<1x128xf32, #tpu.memory_space<vmem>>, vector<1x128xf32>
    %43 = vector.broadcast %42 : vector<1x128xf32> to vector<64x128xf32>
    %44 = arith.addf %41, %43 : vector<64x128xf32>
    %45 = arith.mulf %44, %44 : vector<64x128xf32>
    %46 = arith.mulf %44, %45 : vector<64x128xf32>
    %cst_32 = arith.constant 4.471500e-02 : f32
    %47 = vector.broadcast %cst_32 : f32 to vector<64x128xf32>
    %48 = arith.mulf %47, %46 : vector<64x128xf32>
    %49 = arith.addf %44, %48 : vector<64x128xf32>
    %cst_33 = arith.constant 0.797884583 : f32
    %50 = vector.broadcast %cst_33 : f32 to vector<64x128xf32>
    %51 = arith.mulf %50, %49 : vector<64x128xf32>
    %52 = math.tanh %51 : vector<64x128xf32>
    %cst_34 = arith.constant 1.000000e+00 : f32
    %53 = vector.broadcast %cst_34 : f32 to vector<64x128xf32>
    %54 = arith.addf %53, %52 : vector<64x128xf32>
    %cst_35 = arith.constant 5.000000e-01 : f32
    %55 = vector.broadcast %cst_35 : f32 to vector<64x128xf32>
    %56 = arith.mulf %55, %54 : vector<64x128xf32>
    %57 = arith.mulf %44, %56 : vector<64x128xf32>
    %58 = arith.addf %57, %38 : vector<64x128xf32>
    %c0_36 = arith.constant 0 : index
    %c0_37 = arith.constant 0 : index
    %59 = vector.load %arg12[%c0_36, %c0_37] : memref<128x128xbf16, #tpu.memory_space<vmem>>, vector<128x128xbf16>
    %cst_38 = arith.constant dense<0.000000e+00> : vector<64x128xf32>
    %60 = tpu.matmul %7, %59, %cst_38 {dimension_numbers = #tpu.dot_dimension_numbers<[1], [0], [0], [1], [0, 0, 1, 1], [], []>} : vector<64x128xbf16>, vector<128x128xbf16>, vector<64x128xf32> -> vector<64x128xf32>
    %61 = arith.truncf %58 : vector<64x128xf32> to vector<64x128xbf16>
    %c0_39 = arith.constant 0 : index
    %c0_40 = arith.constant 0 : index
    %62 = vector.load %arg13[%c0_39, %c0_40] : memref<128x128xbf16, #tpu.memory_space<vmem>>, vector<128x128xbf16>
    %cst_41 = arith.constant dense<0.000000e+00> : vector<64x128xf32>
    %63 = tpu.matmul %61, %62, %cst_41 {dimension_numbers = #tpu.dot_dimension_numbers<[1], [0], [0], [1], [0, 0, 1, 1], [], []>} : vector<64x128xbf16>, vector<128x128xbf16>, vector<64x128xf32> -> vector<64x128xf32>
    %64 = arith.addf %60, %63 : vector<64x128xf32>
    %c0_42 = arith.constant 0 : index
    %c0_43 = arith.constant 0 : index
    %65 = memref.load %arg14[%c0_42, %c0_43] : memref<1x1xf32, #tpu.memory_space<smem>>
    %66 = vector.broadcast %65 : f32 to vector<64x128xf32>
    %67 = arith.addf %64, %66 : vector<64x128xf32>
    %68 = arith.truncf %67 : vector<64x128xf32> to vector<64x128xbf16>
    %69 = vector.shape_cast %68 : vector<64x128xbf16> to vector<2x32x128xbf16>
    %c0_44 = arith.constant 0 : index
    %c0_45 = arith.constant 0 : index
    %c0_46 = arith.constant 0 : index
    %70 = vector.load %arg15[%c0_44, %c0_45, %c0_46] : memref<2x32x128xbf16, #tpu.memory_space<vmem>>, vector<2x32x128xbf16>
    tpu.vector_store %arg15[%c0_44, %c0_45, %c0_46], %69 {strides = array<i32>} : memref<2x32x128xbf16, #tpu.memory_space<vmem>>, vector<2x32x128xbf16>,
    return
  }
  func.func @transform_0(%arg0: i32) -> (i32, i32, i32) {
    %c0_i32 = arith.constant 0 : i32
    %c0_i32_0 = arith.constant 0 : i32
    %c0_i32_1 = arith.constant 0 : i32
    return %arg0, %c0_i32, %c0_i32_0 : i32, i32, i32
  }
  func.func @transform_1(%arg0: i32) -> (i32, i32) {
    %c0_i32 = arith.constant 0 : i32
    %c0_i32_0 = arith.constant 0 : i32
    %c0_i32_1 = arith.constant 0 : i32
    return %c0_i32, %c0_i32_0 : i32, i32
  }
  func.func @transform_2(%arg0: i32) -> (i32, i32) {
    %c0_i32 = arith.constant 0 : i32
    %c0_i32_0 = arith.constant 0 : i32
    %c0_i32_1 = arith.constant 0 : i32
    return %c0_i32, %c0_i32_0 : i32, i32
  }
  func.func @transform_3(%arg0: i32) -> (i32, i32) {
    %c0_i32 = arith.constant 0 : i32
    %c0_i32_0 = arith.constant 0 : i32
    %c0_i32_1 = arith.constant 0 : i32
    return %c0_i32, %c0_i32_0 : i32, i32
  }
  func.func @transform_4(%arg0: i32) -> (i32, i32) {
    %c0_i32 = arith.constant 0 : i32
    %c0_i32_0 = arith.constant 0 : i32
    %c0_i32_1 = arith.constant 0 : i32
    return %c0_i32, %c0_i32_0 : i32, i32
  }
  func.func @transform_5(%arg0: i32) -> (i32, i32) {
    %c0_i32 = arith.constant 0 : i32
    %c0_i32_0 = arith.constant 0 : i32
    %c0_i32_1 = arith.constant 0 : i32
    return %c0_i32, %c0_i32_0 : i32, i32
  }
  func.func @transform_6(%arg0: i32) -> (i32, i32) {
    %c0_i32 = arith.constant 0 : i32
    %c0_i32_0 = arith.constant 0 : i32
    %c0_i32_1 = arith.constant 0 : i32
    return %c0_i32, %c0_i32_0 : i32, i32
  }
  func.func @transform_7(%arg0: i32) -> (i32, i32) {
    %c0_i32 = arith.constant 0 : i32
    %c0_i32_0 = arith.constant 0 : i32
    %c0_i32_1 = arith.constant 0 : i32
    return %c0_i32, %c0_i32_0 : i32, i32
  }
  func.func @transform_8(%arg0: i32) -> (i32, i32) {
    %c0_i32 = arith.constant 0 : i32
    %c0_i32_0 = arith.constant 0 : i32
    %c0_i32_1 = arith.constant 0 : i32
    return %c0_i32, %c0_i32_0 : i32, i32
  }
  func.func @transform_9(%arg0: i32) -> (i32, i32) {
    %c0_i32 = arith.constant 0 : i32
    %c0_i32_0 = arith.constant 0 : i32
    %c0_i32_1 = arith.constant 0 : i32
    return %c0_i32, %c0_i32_0 : i32, i32
  }
  func.func @transform_10(%arg0: i32) -> (i32, i32) {
    %c0_i32 = arith.constant 0 : i32
    %c0_i32_0 = arith.constant 0 : i32
    %c0_i32_1 = arith.constant 0 : i32
    return %c0_i32, %c0_i32_0 : i32, i32
  }
  func.func @transform_11(%arg0: i32) -> (i32, i32) {
    %c0_i32 = arith.constant 0 : i32
    %c0_i32_0 = arith.constant 0 : i32
    %c0_i32_1 = arith.constant 0 : i32
    return %c0_i32, %c0_i32_0 : i32, i32
  }
  func.func @transform_12(%arg0: i32) -> (i32, i32) {
    %c0_i32 = arith.constant 0 : i32
    %c0_i32_0 = arith.constant 0 : i32
    %c0_i32_1 = arith.constant 0 : i32
    return %c0_i32, %c0_i32_0 : i32, i32
  }
  func.func @transform_13(%arg0: i32) -> (i32, i32) {
    %c0_i32 = arith.constant 0 : i32
    %c0_i32_0 = arith.constant 0 : i32
    %c0_i32_1 = arith.constant 0 : i32
    return %c0_i32, %c0_i32_0 : i32, i32
  }
  func.func @transform_14(%arg0: i32) -> (i32, i32, i32) {
    %c0_i32 = arith.constant 0 : i32
    %c0_i32_0 = arith.constant 0 : i32
    %c0_i32_1 = arith.constant 0 : i32
    return %arg0, %c0_i32, %c0_i32_0 : i32, i32, i32
  }
}

</mosaic_0001>

<bundles_post_ra>
// kernel: tpu_custom_call.1
= control target key start
LH: loop header
LB: loop body
LE: loop exit
PB: predicated region body
PF: predicated region fallthrough
CT: control target
= control target key end

     0   :  { %20 = vsyncpa [#allocation4], 0  ;;  %s2579_s0 = inlined_call_operand.vmem [shape: bf16[2,32,8], index: 0, kind: input, shape index: {}]   ;;  %s2580_s1 = inlined_call_operand.vmem [shape: bf16[8,128], index: 1, kind: input, shape index: {}]   ;;  %s2581_s2 = inlined_call_operand.vmem [shape: f32[1,128], index: 2, kind: input, shape index: {}]   ;;  %s2582_s3 = inlined_call_operand.vmem [shape: bf16[64,64], index: 3, kind: input, shape index: {}]   ;;  %s2583_s4 = inlined_call_operand.hbm [shape: bf16[64,64], index: 4, kind: input, shape index: {}]   ;;  %s2584_s5 = inlined_call_operand.hbm [shape: bf16[128,128], index: 5, kind: input, shape index: {}]   ;;  %s2585_s6 = inlined_call_operand.hbm [shape: bf16[128,128], index: 6, kind: input, shape index: {}]   ;;  %s2586_s7 = inlined_call_operand.hbm [shape: bf16[128,128], index: 7, kind: input, shape index: {}]   ;;  %s2587_s8 = inlined_call_operand.vmem [shape: f32[1,128], index: 8, kind: input, shape index: {}]   ;;  %s2588_s9 = inlined_call_operand.hbm [shape: bf16[128,128], index: 9, kind: input, shape index: {}]   ;;  %s2589_s10 = inlined_call_operand.vmem [shape: f32[1,128], index: 10, kind: input, shape index: {}]   ;;  %s2590_s11 = inlined_call_operand.hbm [shape: bf16[128,128], index: 11, kind: input, shape index: {}]   ;;  %s2591_s12 = inlined_call_operand.hbm [shape: bf16[128,128], index: 12, kind: input, shape index: {}]   ;;  %s2592_s13 = inlined_call_operand.<no memory space> [shape: f32[1,1], index: 13, kind: input, shape index: {}]   ;;  %s2593_s14 = inlined_call_operand.hbm [shape: bf16[2,32,128], index: 14, kind: output, shape index: {}]  }
   0x1   :  { %21 = vsyncpa [#allocation7], 0 }
   0x2   :  { %22 = vsyncpa [#allocation10], 0 }
   0x3   :  { %23 = vsyncpa [#allocation13], 0 }
   0x4   :  { %24 = vsyncpa [#allocation5], 0  ;;  %s2194_s29 = smov [#allocation6]   ;;  %s2195_s15 = smov [#allocation9]  }
   0x5   :  { %s50_s30 = sshll.u32 %s2194_s29, 4  ;;  %s74_s16 = sshll.u32 %s2195_s15, 4  ;;  %s51_s30 = int_to_ptr.vmem [resolvable:$true] %s50_s30  ;;  %s75_s16 = int_to_ptr.vmem [resolvable:$true] %s74_s16 }
   0x6   :  { %s2032_s17 = scalar_lea.vmem %s51_s30, 1024  ;;  %p2037_p1 = scmp.lt.s32.totalorder %s51_s30, %s51_s30 }
   0x7   :  { %p2033_p0 = scmp.ne.s32.totalorder %s51_s30, %s2032_s17  ;;  %p2038_p2 = scmp.lt.s32.totalorder %s2032_s17, %s2032_s17 }
   0x9   :  { %p2039_p3 = por %p2038_p2, %p2037_p1 }
   0xb   :  { %p2040_p4 = pnand %p2039_p3, %p2033_p0 }
   0xd   :  { %2043 = shalt.err (!%p2040_p4)
}
   0xe   :  { %s2196_s18 = smov 64   ;;  %s2197_s19 = smov 4  }
   0xf   :  { %56 = dma.hbm_to_vmem [thread:$0]  %s2584_s5, 1024, %s51_s30, [#allocation7], %s2196_s18, %s2196_s18, %s2197_s19  }
  0x10   :  { %s2052_s22 = scalar_lea.vmem %s75_s16, 1024  ;;  %p2057_p6 = scmp.lt.s32.totalorder %s75_s16, %s75_s16 }
  0x11   :  { %p2053_p5 = scmp.ne.s32.totalorder %s75_s16, %s2052_s22  ;;  %p2058_p7 = scmp.lt.s32.totalorder %s2052_s22, %s2052_s22 }
  0x13   :  { %p2059_p8 = por %p2058_p7, %p2057_p6 }
  0x15   :  { %p2060_p9 = pnand %p2059_p8, %p2053_p5 }
  0x17   :  { %2063 = shalt.err (!%p2060_p9)
}
  0x18   :  { %80 = dma.hbm_to_vmem [thread:$0]  %s2586_s7, 1024, %s75_s16, [#allocation10], %s2196_s18, %s2196_s18, %s2197_s19  }
  0x19   :  { %s2198_s25 = smov [#allocation12]   ;;  %s2199_s27 = smov [#allocation3]  }
  0x1a   :  { %s102_s26 = sshll.u32 %s2198_s25, 4  ;;  %s38_s28 = sshll.u32 %s2199_s27, 4  ;;  %s103_s26 = int_to_ptr.vmem [resolvable:$true] %s102_s26  ;;  %s39_s28 = int_to_ptr.vmem [resolvable:$true] %s38_s28 }
  0x1b   :  { %s2072_s5 = scalar_lea.vmem %s103_s26, 1024  ;;  %p2077_p11 = scmp.lt.s32.totalorder %s103_s26, %s103_s26 }
  0x1c   :  { %p2073_p10 = scmp.ne.s32.totalorder %s103_s26, %s2072_s5  ;;  %p2078_p12 = scmp.lt.s32.totalorder %s2072_s5, %s2072_s5 }
  0x1e   :  { %p2079_p13 = por %p2078_p12, %p2077_p11 }
  0x20   :  { %p2080_p0 = pnand %p2079_p13, %p2073_p10 }
  0x22   :  { %2083 = shalt.err (!%p2080_p0)
}
  0x23   :  { %108 = dma.hbm_to_vmem [thread:$0]  %s2590_s11, 1024, %s103_s26, [#allocation13], %s2196_s18, %s2196_s18, %s2197_s19  }
  0x24   :  { %s2092_s7 = scalar_lea.vmem %s39_s28, 512  ;;  %p2097_p2 = scmp.lt.s32.totalorder %s39_s28, %s39_s28 }
  0x25   :  { %p2093_p1 = scmp.ne.s32.totalorder %s39_s28, %s2092_s7  ;;  %p2098_p3 = scmp.lt.s32.totalorder %s2092_s7, %s2092_s7 }
  0x27   :  { %p2099_p4 = por %p2098_p3, %p2097_p2 }
  0x29   :  { %p2100_p5 = pnand %p2099_p4, %p2093_p1 }
  0x2b   :  { %2103 = shalt.err (!%p2100_p5)
}
  0x2c   :  { %44 = dma.hbm_to_vmem [thread:$0]  %s2583_s4, 512, %s39_s28, [#allocation4], %s2196_s18, %s2196_s18, %s2197_s19  }
  0x2d   :  { %s2200_s17 = smov [#allocation8]   ;;  %s2201_s21 = smov [#allocation11]  }
  0x2e   :  { %s62_s20 = sshll.u32 %s2200_s17, 4  ;;  %s88_s22 = sshll.u32 %s2201_s21, 4  ;;  %s63_s20 = int_to_ptr.vmem [resolvable:$true] %s62_s20  ;;  %s89_s22 = int_to_ptr.vmem [resolvable:$true] %s88_s22 }
  0x2f   :  { %s2112_s11 = scalar_lea.vmem %s63_s20, 1024  ;;  %p2117_p7 = scmp.lt.s32.totalorder %s63_s20, %s63_s20 }
  0x30   :  { %p2113_p6 = scmp.ne.s32.totalorder %s63_s20, %s2112_s11  ;;  %p2118_p8 = scmp.lt.s32.totalorder %s2112_s11, %s2112_s11 }
  0x32   :  { %p2119_p9 = por %p2118_p8, %p2117_p7 }
  0x34   :  { %p2120_p10 = pnand %p2119_p9, %p2113_p6 }
  0x36   :  { %2123 = shalt.err (!%p2120_p10)
}
  0x37   :  { %68 = dma.hbm_to_vmem [thread:$0]  %s2585_s6, 1024, %s63_s20, [#allocation7], %s2196_s18, %s2196_s18, %s2197_s19  }
  0x38   :  { %s2132_s4 = scalar_lea.vmem %s89_s22, 1024  ;;  %p2137_p12 = scmp.lt.s32.totalorder %s89_s22, %s89_s22 }
  0x39   :  { %p2133_p11 = scmp.ne.s32.totalorder %s89_s22, %s2132_s4  ;;  %p2138_p13 = scmp.lt.s32.totalorder %s2132_s4, %s2132_s4 }
  0x3b   :  { %p2139_p0 = por %p2138_p13, %p2137_p12 }
  0x3d   :  { %p2140_p1 = pnand %p2139_p0, %p2133_p11 }
  0x3f   :  { %2143 = shalt.err (!%p2140_p1)
}
  0x40   :  { %94 = dma.hbm_to_vmem [thread:$0]  %s2588_s9, 1024, %s89_s22, [#allocation10], %s2196_s18, %s2196_s18, %s2197_s19  }
  0x41   :  { %s2202_s27 = smov [#allocation14]  }
  0x42   :  { %s114_s28 = sshll.u32 %s2202_s27, 4  ;;  %s115_s28 = int_to_ptr.vmem [resolvable:$true] %s114_s28 }
  0x43   :  { %s2152_s5 = scalar_lea.vmem %s115_s28, 1024  ;;  %p2157_p3 = scmp.lt.s32.totalorder %s115_s28, %s115_s28 }
  0x44   :  { %p2153_p2 = scmp.ne.s32.totalorder %s115_s28, %s2152_s5  ;;  %p2158_p4 = scmp.lt.s32.totalorder %s2152_s5, %s2152_s5 }
  0x46   :  { %p2159_p5 = por %p2158_p4, %p2157_p3 }
  0x48   :  { %p2160_p6 = pnand %p2159_p5, %p2153_p2 }
  0x4a   :  { %2163 = shalt.err (!%p2160_p6)
}
  0x4b   :  { %120 = dma.hbm_to_vmem [thread:$0]  %s2591_s12, 1024, %s115_s28, [#allocation13], %s2196_s18, %s2196_s18, %s2197_s19  }
  0x4c   :  { %2184 = dma.done.wait [#allocation4], 512  }
  0x4d   :  { %2185 = vsyncadd [#allocation4], 4294966784 }
  0x4e   :  { %2186 = dma.done.wait [#allocation7], 2048  }
  0x4f   :  { %2187 = vsyncadd [#allocation7], 4294965248 }
  0x50   :  { %2188 = dma.done.wait [#allocation10], 2048  }
  0x51   :  { %2189 = vsyncadd [#allocation10], 4294965248 }
  0x52   :  { %2190 = dma.done.wait [#allocation13], 2048  }
  0x53   :  { %2191 = vsyncadd [#allocation13], 4294965248  ;;  %vm194_vm0 = vcmask 1043456   ;;  %vm181_vm1 = vcmask 64512   ;;  %v153_v0 = vld [vmem:[%s2580_s1] sm:$0xf] }
  0x54   :  { %1921 = vmatprep.subr.msk.bf16.mxu0 %vm194_vm0, %v153_v0  ;;  %v196_v1 = vsel %vm194_vm0, %v153_v0, 0  ;;  %v1932_v2 = vld [vmem:[%s2579_s0] sm:$0xff]   ;;  %v1933_v3 = vld [vmem:[%s2579_s0 + $0x8] sm:$0xff]   ;;  %v1934_v4 = vld [vmem:[%s2579_s0 + $0x10] sm:$0xff]   ;;  %vm295_vm2 = vcmask 523264  }
  0x55   :  { %1736 = vmatpush3.bf16.msra.mxu0 %v196_v1  ;;  %1737 = vmatprep.mubr.msk.bf16.mxu0 %vm181_vm1, %v1932_v2  ;;  %v1935_v5 = vld [vmem:[%s2579_s0 + $0x18] sm:$0xff]   ;;  %v1936_v6 = vld [vmem:[%s2582_s3] sm:$0xff]   ;;  %v1938_v31 = vld [vmem:[%s2582_s3 + $0x8] sm:$0xff]  }
  0x56   :  { %v1937_v7 = vld [vmem:[#allocation3] sm:$0xff]   ;;  %1753 = vmatprep.mubr.msk.bf16.mxu1 %vm295_vm2, %v1936_v6  ;;  %v1940_v29 = vld [vmem:[#allocation6 + $0x38] sm:$0xff]   ;;  %v1939_v32 = vld [vmem:[#allocation3 + $0x8] sm:$0xff]  }
  0x57   :  { %v1528_v14 = vld [vmem:[%s2581_s2] ss:$0 sm:$0xff]  ;;  %v1952_v30 = vld [vmem:[#allocation8 + $0x38] sm:$0xff]   ;;  %v1942_v33 = vld [vmem:[%s2582_s3 + $0x10] sm:$0xff]  }
  0x58   :  { %1738 = vmatmul.mubr.msk.bf16.vlgmr.msra.gmra.mxu0 %vm181_vm1, %v1933_v3  ;;  %v1941_v34 = vld [vmem:[#allocation6 + $0x30] sm:$0xff]   ;;  %v1946_v37 = vld [vmem:[#allocation6 + $0x28] sm:$0xff]   ;;  %v1944_v38 = vld [vmem:[%s2582_s3 + $0x18] sm:$0xff]  }
  0x59   :  { %1741 = vmatprep.mubr.msk.bf16.mxu0 %vm181_vm1, %v1934_v4  ;;  %v1943_v35 = vld [vmem:[#allocation3 + $0x10] sm:$0xff]   ;;  %v1945_v39 = vld [vmem:[#allocation3 + $0x18] sm:$0xff]   ;;  %v1947_v40 = vld [vmem:[#allocation6 + $0x20] sm:$0xff]  }
  0x5a   :  { %v1953_v36 = vld [vmem:[#allocation8 + $0x30] sm:$0xff]   ;;  %v1954_v41 = vld [vmem:[#allocation8 + $0x28] sm:$0xff]   ;;  %v1955_v42 = vld [vmem:[#allocation8 + $0x20] sm:$0xff]  }
  0x5b   :  { %v1948_v43 = vld [vmem:[#allocation6 + $0x18] sm:$0xff]   ;;  %v1949_v45 = vld [vmem:[#allocation6 + $0x10] sm:$0xff]   ;;  %v1950_v47 = vld [vmem:[#allocation6 + $0x8] sm:$0xff]  }
  0x5c   :  { %v1956_v44 = vld [vmem:[#allocation8 + $0x18] sm:$0xff]   ;;  %v1957_v46 = vld [vmem:[#allocation8 + $0x10] sm:$0xff]   ;;  %v1951_v48 = vld [vmem:[#allocation6] sm:$0xff]  }
  0x5d   :  { %v1958_v49 = vld [vmem:[#allocation8 + $0x8] sm:$0xff]   ;;  %v1959_v50 = vld [vmem:[#allocation8] sm:$0xff]   ;;  %v1960_v51 = vld [vmem:[#allocation9 + $0x38] sm:$0xff]  }
  0x5e   :  { %v1961_v61 = vld [vmem:[#allocation9 + $0x30] sm:$0xff]   ;;  %v1962_v1 = vld [vmem:[#allocation9 + $0x28] sm:$0xff]  }
  0x60   :  { %1742 = vmatmul.mubr.msk.bf16.gmra.mxu0 %vm181_vm1, %v1935_v5 }
  0x61   :  { %1769 = vmatprep.mubr.msk.bf16.mxu0 %vm295_vm2, %v1937_v7  ;;  %v1963_v7 = vld [vmem:[#allocation9 + $0x20] sm:$0xff]  }
 0x118   :  { %v1739_v8 = vpop.f32.mrf.mxu0 }
 0x119   :  { %v2366_v24 = vadd.f32 %v1739_v8, %v1528_v14  ;;  %v1964_v8 = vld [vmem:[#allocation9 + $0x18] sm:$0xff]  }
 0x11a   :  { %v232_v9 = vpop.f32.mrf.mxu0 }
 0x11b   :  { %v2378_v27 = vadd.f32 %v1528_v14, %v232_v9  ;;  %v1965_v9 = vld [vmem:[#allocation9 + $0x10] sm:$0xff]  }
 0x11c   :  { %v1740_v10 = vpop.f32.mrf.mxu0 }
 0x11d   :  { %v2356_v22 = vadd.f32 %v1740_v10, %v1528_v14 }
 0x11e   :  { %v235_v11 = vpop.f32.mrf.mxu0 }
 0x11f   :  { %v2372_v25 = vpack.c.bf16 %v2356_v22, %v2366_v24  ;;  %v2374_v26 = vadd.f32 %v1528_v14, %v235_v11  ;;  %v1966_v11 = vld [vmem:[#allocation9 + $0x8] sm:$0xff]  }
 0x120   :  { %v1743_v12 = vpop.f32.mrf.mxu0 }
 0x121   :  { %v2344_v16 = vadd.f32 %v1743_v12, %v1528_v14  ;;  %v2384_v28 = vpack.c.bf16 %v2374_v26, %v2378_v27 }
 0x122   :  { %v248_v13 = vpop.f32.mrf.mxu0 }
 0x123   :  { %v2348_v19 = vadd.f32 %v1528_v14, %v248_v13  ;;  %v1967_v13 = vld [vmem:[#allocation9] sm:$0xff]  }
 0x124   :  { %v1744_v15 = vpop.f32.mrf.mxu0 }
 0x125   :  { %v2346_v17 = vadd.f32 %v1744_v15, %v1528_v14 }
 0x126   :  { %v251_v18 = vpop.f32.mrf.mxu0 }
 0x127   :  { %v2352_v20 = vpack.c.bf16 %v2346_v17, %v2344_v16  ;;  %v2354_v21 = vadd.f32 %v1528_v14, %v251_v18 }
 0x129   :  { %v2360_v23 = vpack.c.bf16 %v2354_v21, %v2348_v19  ;;  %1745 = vmatprep.subr.bf16.mxu1 %v2352_v20  ;;  %1761 = vmatprep.subr.bf16.mxu0 %v2352_v20 }
 0x12a   :  { %1746 = vmatpush3.bf16.msra.mxu1 %v2352_v20  ;;  %1762 = vmatpush3.bf16.msra.mxu0 %v2352_v20 }
 0x12b   :  { %1747 = vmatprep.subr.bf16.mxu1 %v2360_v23  ;;  %1763 = vmatprep.subr.bf16.mxu0 %v2360_v23 }
 0x12e   :  { %1748 = vmatpush3.bf16.msra.mxu1 %v2360_v23  ;;  %1764 = vmatpush3.bf16.msra.mxu0 %v2360_v23 }
 0x12f   :  { %1749 = vmatprep.subr.bf16.mxu1 %v2372_v25  ;;  %1765 = vmatprep.subr.bf16.mxu0 %v2372_v25 }
 0x132   :  { %1750 = vmatpush3.bf16.msra.mxu1 %v2372_v25  ;;  %1766 = vmatpush3.bf16.msra.mxu0 %v2372_v25 }
 0x133   :  { %1751 = vmatprep.subr.bf16.mxu1 %v2384_v28  ;;  %1767 = vmatprep.subr.bf16.mxu0 %v2384_v28 }
 0x136   :  { %1752 = vmatpush3.bf16.msra.mxu1 %v2384_v28  ;;  %1768 = vmatpush3.bf16.msra.mxu0 %v2384_v28 }
 0x137   :  { %1801 = vmatprep.subr.bf16.mxu0 %v1940_v29  ;;  %1777 = vmatprep.subr.bf16.mxu1 %v1952_v30 }
 0x139   :  { %1754 = vmatmul.mubr.msk.bf16.vlgmr.msra.gmra.mxu1 %vm295_vm2, %v1938_v31  ;;  %1770 = vmatmul.mubr.msk.bf16.vlgmr.msra.gmra.mxu0 %vm295_vm2, %v1939_v32  ;;  %v1968_v31 = vld [vmem:[#allocation11 + $0x38] sm:$0xff]   ;;  %v1969_v32 = vld [vmem:[#allocation11 + $0x30] sm:$0xff]  }
 0x13a   :  { %1802 = vmatpush3.bf16.msra.mxu0 %v1940_v29  ;;  %1757 = vmatprep.mubr.msk.bf16.mxu1 %vm295_vm2, %v1942_v33  ;;  %v1970_v33 = vld [vmem:[#allocation11 + $0x28] sm:$0xff]  }
 0x13b   :  { %1803 = vmatprep.subr.bf16.mxu0 %v1941_v34  ;;  %1773 = vmatprep.mubr.msk.bf16.mxu0 %vm295_vm2, %v1943_v35  ;;  %v1972_v35 = vld [vmem:[#allocation11 + $0x18] sm:$0xff]  }
 0x13c   :  { %1778 = vmatpush3.bf16.msra.mxu1 %v1952_v30 }
 0x13d   :  { %1779 = vmatprep.subr.bf16.mxu1 %v1953_v36 }
 0x13e   :  { %1804 = vmatpush3.bf16.msra.mxu0 %v1941_v34  ;;  %v1971_v34 = vld [vmem:[#allocation11 + $0x20] sm:$0xff]  }
 0x13f   :  { %1805 = vmatprep.subr.bf16.mxu0 %v1946_v37 }
 0x140   :  { %1780 = vmatpush3.bf16.msra.mxu1 %v1953_v36  ;;  %v1973_v36 = vld [vmem:[#allocation11 + $0x10] sm:$0xff]  }
 0x141   :  { %1758 = vmatmul.mubr.msk.bf16.gmra.mxu1 %vm295_vm2, %v1944_v38  ;;  %1774 = vmatmul.mubr.msk.bf16.gmra.mxu0 %vm295_vm2, %v1945_v39  ;;  %v1975_v38 = vld [vmem:[#allocation11] sm:$0xff]   ;;  %v2411_v39 = vld [vmem:[#allocation12 + $0x38] sm:$0xff]  }
 0x142   :  { %1806 = vmatpush3.bf16.msra.mxu0 %v1946_v37  ;;  %1817 = vmatprep.mubr.bf16.mxu0 %v2384_v28  ;;  %v1974_v37 = vld [vmem:[#allocation11 + $0x8] sm:$0xff]  }
 0x143   :  { %1807 = vmatprep.subr.bf16.mxu0 %v1947_v40  ;;  %1781 = vmatprep.subr.bf16.mxu1 %v1954_v41 }
 0x144   :  { %1782 = vmatpush3.bf16.msra.mxu1 %v1954_v41 }
 0x145   :  { %1783 = vmatprep.subr.bf16.mxu1 %v1955_v42 }
 0x146   :  { %1808 = vmatpush3.bf16.msra.mxu0 %v1947_v40 }
 0x147   :  { %1809 = vmatprep.subr.bf16.mxu0 %v1948_v43 }
 0x148   :  { %1784 = vmatpush3.bf16.msra.mxu1 %v1955_v42 }
 0x149   :  { %1785 = vmatprep.subr.bf16.mxu1 %v1956_v44 }
 0x14a   :  { %1810 = vmatpush3.bf16.msra.mxu0 %v1948_v43 }
 0x14b   :  { %1811 = vmatprep.subr.bf16.mxu0 %v1949_v45 }
 0x14c   :  { %1786 = vmatpush3.bf16.msra.mxu1 %v1956_v44 }
 0x14d   :  { %1787 = vmatprep.subr.bf16.mxu1 %v1957_v46 }
 0x14e   :  { %1812 = vmatpush3.bf16.msra.mxu0 %v1949_v45 }
 0x14f   :  { %1813 = vmatprep.subr.bf16.mxu0 %v1950_v47 }
 0x150   :  { %1788 = vmatpush3.bf16.msra.mxu1 %v1957_v46 }
 0x151   :  { %1789 = vmatprep.subr.bf16.mxu1 %v1958_v49 }
 0x152   :  { %1814 = vmatpush3.bf16.msra.mxu0 %v1950_v47 }
 0x153   :  { %1815 = vmatprep.subr.bf16.mxu0 %v1951_v48 }
 0x154   :  { %1790 = vmatpush3.bf16.msra.mxu1 %v1958_v49 }
 0x155   :  { %1791 = vmatprep.subr.bf16.mxu1 %v1959_v50 }
 0x156   :  { %1816 = vmatpush3.bf16.msra.mxu0 %v1951_v48 }
 0x157   :  { %1849 = vmatprep.subr.bf16.mxu0 %v1968_v31 }
 0x158   :  { %1792 = vmatpush3.bf16.msra.mxu1 %v1959_v50 }
 0x159   :  { %1818 = vmatmul.mubr.bf16.vlgmr.msra.gmra.mxu0 %v2372_v25  ;;  %1825 = vmatprep.subr.bf16.mxu1 %v1960_v51 }
 0x15a   :  { %1821 = vmatprep.mubr.bf16.mxu0 %v2360_v23  ;;  %1850 = vmatpush3.bf16.msra.mxu0 %v1968_v31 }
 0x15b   :  { %1851 = vmatprep.subr.bf16.mxu0 %v1969_v32 }
 0x15e   :  { %1852 = vmatpush3.bf16.msra.mxu0 %v1969_v32 }
 0x15f   :  { %1853 = vmatprep.subr.bf16.mxu0 %v1970_v33 }
 0x161   :  { %1822 = vmatmul.mubr.bf16.gmra.mxu0 %v2352_v20 }
 0x162   :  { %1854 = vmatpush3.bf16.msra.mxu0 %v1970_v33 }
 0x163   :  { %1855 = vmatprep.subr.bf16.mxu0 %v1971_v34 }
 0x166   :  { %1856 = vmatpush3.bf16.msra.mxu0 %v1971_v34 }
 0x167   :  { %1857 = vmatprep.subr.bf16.mxu0 %v1972_v35 }
 0x16a   :  { %1858 = vmatpush3.bf16.msra.mxu0 %v1972_v35 }
 0x16b   :  { %1859 = vmatprep.subr.bf16.mxu0 %v1973_v36 }
 0x16e   :  { %1860 = vmatpush3.bf16.msra.mxu0 %v1973_v36 }
 0x16f   :  { %1861 = vmatprep.subr.bf16.mxu0 %v1974_v37 }
 0x172   :  { %1862 = vmatpush3.bf16.msra.mxu0 %v1974_v37 }
 0x173   :  { %1863 = vmatprep.subr.bf16.mxu0 %v1975_v38 }
 0x176   :  { %1864 = vmatpush3.bf16.msra.mxu0 %v1975_v38 }
 0x177   :  { %1897 = vmatprep.subr.bf16.mxu0 %v2411_v39 }
 0x1f9   :  { %v1755_v52 = vpop.f32.mrf.mxu1  ;;  %v1771_v54 = vpop.f32.mrf.mxu0 }
 0x1fb   :  { %v342_v53 = vpop.f32.mrf.mxu1  ;;  %v447_v57 = vpop.f32.mrf.mxu0 }
 0x1fd   :  { %v1756_v55 = vpop.f32.mrf.mxu1  ;;  %v1772_v63 = vpop.f32.mrf.mxu0 }
 0x1fe   :  { %v495_v59 = vpack.c.bf16 %v1756_v55, %v1755_v52  ;;  %v741_v29 = vpack.c.bf16 %v1772_v63, %v1771_v54  ;;  %v1577_v54 = vld [vmem:[%s2587_s8] ss:$0 sm:$0xff] }
 0x1ff   :  { %v345_v56 = vpop.f32.mrf.mxu1  ;;  %v450_v4 = vpop.f32.mrf.mxu0 }
 0x200   :  { %v494_v58 = vpack.c.bf16 %v345_v56, %v342_v53  ;;  %v740_v6 = vpack.c.bf16 %v450_v4, %v447_v57 }
 0x201   :  { %v1759_v60 = vpop.f32.mrf.mxu1  ;;  %v1775_v10 = vpop.f32.mrf.mxu0 }
 0x202   :  { %1793 = vmatprep.mubr.bf16.mxu1 %v494_v58 }
 0x203   :  { %v358_v62 = vpop.f32.mrf.mxu1  ;;  %1794 = vmatmul.mubr.bf16.vlgmr.msra.gmra.mxu1 %v495_v59  ;;  %v463_v12 = vpop.f32.mrf.mxu0 }
 0x204   :  { %1826 = vmatpush3.bf16.msra.mxu1 %v1960_v51 }
 0x205   :  { %v1760_v0 = vpop.f32.mrf.mxu1  ;;  %1827 = vmatprep.subr.bf16.mxu1 %v1961_v61  ;;  %v1776_v14 = vpop.f32.mrf.mxu0 }
 0x206   :  { %v497_v2 = vpack.c.bf16 %v1760_v0, %v1759_v60  ;;  %v743_v30 = vpack.c.bf16 %v1776_v14, %v1775_v10 }
 0x207   :  { %v361_v3 = vpop.f32.mrf.mxu1  ;;  %v466_v15 = vpop.f32.mrf.mxu0 }
 0x208   :  { %v496_v5 = vpack.c.bf16 %v361_v3, %v358_v62  ;;  %1828 = vmatpush3.bf16.msra.mxu1 %v1961_v61  ;;  %v742_v18 = vpack.c.bf16 %v466_v15, %v463_v12 }
 0x209   :  { %1829 = vmatprep.subr.bf16.mxu1 %v1962_v1 }
 0x20a   :  { %1797 = vmatprep.mubr.bf16.mxu1 %v496_v5 }
 0x20b   :  { %1798 = vmatmul.mubr.bf16.gmra.mxu1 %v497_v2 }
 0x20c   :  { %1830 = vmatpush3.bf16.msra.mxu1 %v1962_v1  ;;  %1841 = vmatprep.mubr.bf16.mxu1 %v740_v6 }
 0x20d   :  { %1831 = vmatprep.subr.bf16.mxu1 %v1963_v7 }
 0x210   :  { %1832 = vmatpush3.bf16.msra.mxu1 %v1963_v7 }
 0x211   :  { %1833 = vmatprep.subr.bf16.mxu1 %v1964_v8 }
 0x214   :  { %1834 = vmatpush3.bf16.msra.mxu1 %v1964_v8 }
 0x215   :  { %1835 = vmatprep.subr.bf16.mxu1 %v1965_v9 }
 0x218   :  { %1836 = vmatpush3.bf16.msra.mxu1 %v1965_v9 }
 0x219   :  { %1837 = vmatprep.subr.bf16.mxu1 %v1966_v11  ;;  %v1819_v44 = vpop.f32.mrf.mxu0 }
 0x21b   :  { %v709_v46 = vpop.f32.mrf.mxu0 }
 0x21c   :  { %1838 = vmatpush3.bf16.msra.mxu1 %v1966_v11 }
 0x21d   :  { %1839 = vmatprep.subr.bf16.mxu1 %v1967_v13  ;;  %v1820_v48 = vpop.f32.mrf.mxu0 }
 0x21f   :  { %v712_v50 = vpop.f32.mrf.mxu0 }
 0x220   :  { %1840 = vmatpush3.bf16.msra.mxu1 %v1967_v13 }
 0x221   :  { %v1823_v55 = vpop.f32.mrf.mxu0 }
 0x223   :  { %1842 = vmatmul.mubr.bf16.vlgmr.msra.gmra.mxu1 %v741_v29  ;;  %v725_v63 = vpop.f32.mrf.mxu0 }
 0x224   :  { %1845 = vmatprep.mubr.bf16.mxu1 %v742_v18 }
 0x225   :  { %v1824_v11 = vpop.f32.mrf.mxu0 }
 0x22b   :  { %1846 = vmatmul.mubr.bf16.gmra.mxu1 %v743_v30 }
 0x2c3   :  { %v1795_v40 = vpop.f32.mrf.mxu1 }
 0x2c4   :  { %v718_v52 = vadd.f32 %v1819_v44, %v1795_v40  ;;  %v728_v40 = vpop.f32.mrf.mxu0 }
 0x2c5   :  { %v596_v41 = vpop.f32.mrf.mxu1 }
 0x2c6   :  { %v710_v56 = vadd.f32 %v709_v46, %v596_v41 }
 0x2c7   :  { %v1796_v42 = vpop.f32.mrf.mxu1 }
 0x2c8   :  { %v721_v59 = vadd.f32 %v1820_v48, %v1796_v42 }
 0x2c9   :  { %v599_v43 = vpop.f32.mrf.mxu1 }
 0x2ca   :  { %v713_v0 = vadd.f32 %v712_v50, %v599_v43 }
 0x2cb   :  { %v1799_v45 = vpop.f32.mrf.mxu1 }
 0x2cc   :  { %v734_v9 = vadd.f32 %v1823_v55, %v1799_v45 }
 0x2cd   :  { %v612_v47 = vpop.f32.mrf.mxu1 }
 0x2ce   :  { %v726_v18 = vadd.f32 %v725_v63, %v612_v47 }
 0x2cf   :  { %v1800_v49 = vpop.f32.mrf.mxu1 }
 0x2d0   :  { %v737_v35 = vadd.f32 %v1824_v11, %v1800_v49 }
 0x2d1   :  { %v615_v51 = vpop.f32.mrf.mxu1 }
 0x2d2   :  { %v729_v45 = vadd.f32 %v728_v40, %v615_v51 }
 0x2e3   :  { %v1843_v53 = vpop.f32.mrf.mxu1 }
 0x2e4   :  { %v875_v57 = vadd.f32 %v1843_v53, %v718_v52 }
 0x2e5   :  { %v842_v58 = vpop.f32.mrf.mxu1 }
 0x2e6   :  { %v2417_v60 = vadd.f32 %v1577_v54, %v875_v57  ;;  %v873_v61 = vadd.f32 %v842_v58, %v710_v56 }
 0x2e7   :  { %v1844_v62 = vpop.f32.mrf.mxu1 }
 0x2e8   :  { %v898_v1 = vmul.f32 %v2417_v60, %v2417_v60  ;;  %v2421_v2 = vadd.f32 %v1577_v54, %v873_v61  ;;  %v876_v3 = vadd.f32 %v1844_v62, %v721_v59 }
 0x2e9   :  { %v845_v4 = vpop.f32.mrf.mxu1 }
 0x2ea   :  { %v906_v5 = vmul.f32 %v898_v1, %v2417_v60  ;;  %v896_v6 = vmul.f32 %v2421_v2, %v2421_v2  ;;  %v2426_v7 = vadd.f32 %v1577_v54, %v876_v3  ;;  %v874_v8 = vadd.f32 %v845_v4, %v713_v0 }
 0x2eb   :  { %v1847_v10 = vpop.f32.mrf.mxu1 }
 0x2ec   :  { %v914_v12 = vmul.f32 0.044715, %v906_v5  ;;  %v904_v13 = vmul.f32 %v896_v6, %v2421_v2  ;;  %v899_v14 = vmul.f32 %v2426_v7, %v2426_v7  ;;  %v2431_v15 = vadd.f32 %v1577_v54, %v874_v8 }
 0x2ed   :  { %v879_v29 = vadd.f32 %v1847_v10, %v734_v9  ;;  %v858_v30 = vpop.f32.mrf.mxu1 }
 0x2ee   :  { %v922_v31 = vadd.f32 %v914_v12, %v2417_v60  ;;  %v912_v32 = vmul.f32 0.044715, %v904_v13  ;;  %v907_v33 = vmul.f32 %v899_v14, %v2426_v7  ;;  %v897_v34 = vmul.f32 %v2431_v15, %v2431_v15 }
 0x2ef   :  { %v2437_v36 = vadd.f32 %v1577_v54, %v879_v29  ;;  %v877_v37 = vadd.f32 %v858_v30, %v726_v18  ;;  %v1848_v38 = vpop.f32.mrf.mxu1 }
 0x2f0   :  { %v930_v41 = vmul.f32 0.7978846, %v922_v31  ;;  %v920_v42 = vadd.f32 %v912_v32, %v2421_v2  ;;  %v915_v43 = vmul.f32 0.044715, %v907_v33  ;;  %v905_v44 = vmul.f32 %v897_v34, %v2431_v15 }
 0x2f1   :  { %v902_v46 = vmul.f32 %v2437_v36, %v2437_v36  ;;  %v2443_v47 = vadd.f32 %v1577_v54, %v877_v37  ;;  %v880_v48 = vadd.f32 %v1848_v38, %v737_v35  ;;  %v861_v50 = vpop.f32.mrf.mxu1 }
 0x2f2   :  { %1992 = vtanh.f32 %v930_v41  ;;  %v928_v49 = vmul.f32 0.7978846, %v920_v42  ;;  %v923_v52 = vadd.f32 %v915_v43, %v2426_v7  ;;  %v913_v53 = vmul.f32 0.044715, %v905_v44 }
 0x2f3   :  { %v910_v55 = vmul.f32 %v902_v46, %v2437_v36  ;;  %v900_v56 = vmul.f32 %v2443_v47, %v2443_v47  ;;  %v2449_v57 = vadd.f32 %v1577_v54, %v880_v48  ;;  %v878_v51 = vadd.f32 %v861_v50, %v729_v45 }
 0x2f4   :  { %1994 = vtanh.f32 %v928_v49  ;;  %v931_v58 = vmul.f32 0.7978846, %v923_v52  ;;  %v921_v59 = vadd.f32 %v913_v53, %v2431_v15 }
 0x2f5   :  { %v918_v61 = vmul.f32 0.044715, %v910_v55  ;;  %v908_v62 = vmul.f32 %v900_v56, %v2443_v47  ;;  %v903_v63 = vmul.f32 %v2449_v57, %v2449_v57  ;;  %v2455_v0 = vadd.f32 %v1577_v54, %v878_v51 }
 0x2f6   :  { %1996 = vtanh.f32 %v931_v58  ;;  %v929_v1 = vmul.f32 0.7978846, %v921_v59 }
 0x2f7   :  { %v926_v3 = vadd.f32 %v918_v61, %v2437_v36  ;;  %v916_v4 = vmul.f32 0.044715, %v908_v62  ;;  %v911_v5 = vmul.f32 %v903_v63, %v2449_v57  ;;  %v901_v6 = vmul.f32 %v2455_v0, %v2455_v0  ;;  %v1977_v62 = vld [vmem:[#allocation12 + $0x30] sm:$0xff]  }
 0x2f8   :  { %1998 = vtanh.f32 %v929_v1 }
 0x2f9   :  { %v934_v8 = vmul.f32 0.7978846, %v926_v3  ;;  %v924_v9 = vadd.f32 %v916_v4, %v2443_v47  ;;  %v919_v10 = vmul.f32 0.044715, %v911_v5  ;;  %v909_v11 = vmul.f32 %v901_v6, %v2455_v0  ;;  %v1978_v5 = vld [vmem:[#allocation12 + $0x28] sm:$0xff]  }
 0x2fb   :  { %2000 = vtanh.f32 %v934_v8  ;;  %v932_v54 = vmul.f32 0.7978846, %v924_v9  ;;  %v927_v12 = vadd.f32 %v919_v10, %v2449_v57  ;;  %v917_v13 = vmul.f32 0.044715, %v909_v11  ;;  %v1986_v10 = vld [vmem:[#allocation14 + $0x28] sm:$0xff]   ;;  %v1987_v11 = vld [vmem:[#allocation14 + $0x20] sm:$0xff]  }
 0x2fd   :  { %2002 = vtanh.f32 %v932_v54  ;;  %v935_v14 = vmul.f32 0.7978846, %v927_v12  ;;  %v925_v18 = vadd.f32 %v917_v13, %v2455_v0  ;;  %v1988_v54 = vld [vmem:[#allocation14 + $0x18] sm:$0xff]   ;;  %v1578_v12 = vld [vmem:[%s2589_s10] ss:$0 sm:$0xff] }
 0x2ff   :  { %v1993_v29 = vpop.eup %1992  ;;  %2004 = vtanh.f32 %v935_v14  ;;  %v933_v30 = vmul.f32 0.7978846, %v925_v18 }
 0x300   :  { %v946_v32 = vadd.f32 1.0, %v1993_v29 }
 0x301   :  { %v1995_v31 = vpop.eup %1994  ;;  %2006 = vtanh.f32 %v933_v30 }
 0x302   :  { %v944_v33 = vadd.f32 1.0, %v1995_v31  ;;  %v954_v40 = vmul.f32 0.5, %v946_v32 }
 0x303   :  { %v1997_v34 = vpop.eup %1996 }
 0x304   :  { %v947_v35 = vadd.f32 1.0, %v1997_v34  ;;  %v952_v37 = vmul.f32 0.5, %v944_v33  ;;  %v962_v48 = vmul.f32 %v954_v40, %v2417_v60 }
 0x305   :  { %v1999_v38 = vpop.eup %1998 }
 0x306   :  { %v955_v41 = vmul.f32 0.5, %v947_v35  ;;  %v945_v42 = vadd.f32 1.0, %v1999_v38  ;;  %v960_v46 = vmul.f32 %v952_v37, %v2421_v2 }
 0x308   :  { %v2001_v43 = vpop.eup %2000  ;;  %v963_v44 = vmul.f32 %v955_v41, %v2426_v7  ;;  %v953_v45 = vmul.f32 0.5, %v945_v42  ;;  %v2473_v51 = vadd.f32 %v960_v46, %v2378_v27  ;;  %v2479_v7 = vadd.f32 %v962_v48, %v2366_v24 }
 0x309   :  { %v950_v52 = vadd.f32 1.0, %v2001_v43 }
 0x30a   :  { %v2003_v50 = vpop.eup %2002  ;;  %v961_v49 = vmul.f32 %v953_v45, %v2431_v15  ;;  %v2470_v53 = vadd.f32 %v963_v44, %v2356_v22 }
 0x30b   :  { %v948_v55 = vadd.f32 1.0, %v2003_v50  ;;  %v958_v61 = vmul.f32 0.5, %v950_v52 }
 0x30c   :  { %v2005_v56 = vpop.eup %2004  ;;  %v2476_v58 = vadd.f32 %v961_v49, %v2374_v26  ;;  %v977_v22 = vpack.c.bf16 %v2470_v53, %v2479_v7 }
 0x30d   :  { %v956_v2 = vmul.f32 0.5, %v948_v55  ;;  %v951_v60 = vadd.f32 1.0, %v2005_v56  ;;  %v966_v3 = vmul.f32 %v958_v61, %v2437_v36 }
 0x30e   :  { %v2007_v59 = vpop.eup %2006  ;;  %v976_v15 = vpack.c.bf16 %v2476_v58, %v2473_v51 }
 0x30f   :  { %v949_v63 = vadd.f32 1.0, %v2007_v59  ;;  %v959_v27 = vmul.f32 0.5, %v951_v60  ;;  %v964_v1 = vmul.f32 %v956_v2, %v2443_v47  ;;  %v2500_v47 = vadd.f32 %v966_v3, %v2344_v16  ;;  %v1982_v16 = vld [vmem:[#allocation12 + $0x8] sm:$0xff]  }
 0x310   :  { %1865 = vmatprep.mubr.bf16.mxu0 %v976_v15 }
 0x311   :  { %1866 = vmatmul.mubr.bf16.vlgmr.msra.gmra.mxu0 %v977_v22  ;;  %v957_v26 = vmul.f32 0.5, %v949_v63  ;;  %v967_v24 = vmul.f32 %v959_v27, %v2449_v57  ;;  %v2494_v8 = vadd.f32 %v964_v1, %v2348_v19  ;;  %v1979_v57 = vld [vmem:[#allocation12 + $0x20] sm:$0xff]   ;;  %v1981_v19 = vld [vmem:[#allocation12 + $0x10] sm:$0xff]  }
 0x312   :  { %1898 = vmatpush3.bf16.msra.mxu0 %v2411_v39 }
 0x313   :  { %1899 = vmatprep.subr.bf16.mxu0 %v1977_v62  ;;  %v965_v4 = vmul.f32 %v957_v26, %v2455_v0  ;;  %v2491_v6 = vadd.f32 %v967_v24, %v2346_v17  ;;  %v1980_v17 = vld [vmem:[#allocation12 + $0x18] sm:$0xff]   ;;  %v1985_v0 = vld [vmem:[#allocation14 + $0x30] sm:$0xff]  }
 0x315   :  { %v2497_v9 = vadd.f32 %v965_v4, %v2354_v21  ;;  %v979_v36 = vpack.c.bf16 %v2491_v6, %v2500_v47  ;;  %v1983_v21 = vld [vmem:[#allocation12] sm:$0xff]  }
 0x316   :  { %1900 = vmatpush3.bf16.msra.mxu0 %v1977_v62 }
 0x317   :  { %v978_v39 = vpack.c.bf16 %v2497_v9, %v2494_v8  ;;  %1901 = vmatprep.subr.bf16.mxu0 %v1978_v5 }
 0x319   :  { %1869 = vmatprep.mubr.bf16.mxu0 %v978_v39 }
 0x31a   :  { %1870 = vmatmul.mubr.bf16.gmra.mxu0 %v979_v36 }
 0x31b   :  { %1902 = vmatpush3.bf16.msra.mxu0 %v1978_v5  ;;  %1913 = vmatprep.mubr.bf16.mxu0 %v2384_v28  ;;  %v1984_v28 = vld [vmem:[#allocation14 + $0x38] sm:$0xff]  }
 0x31c   :  { %1903 = vmatprep.subr.bf16.mxu0 %v1979_v57  ;;  %1873 = vmatprep.subr.bf16.mxu1 %v1984_v28 }
 0x31d   :  { %1874 = vmatpush3.bf16.msra.mxu1 %v1984_v28 }
 0x31e   :  { %1875 = vmatprep.subr.bf16.mxu1 %v1985_v0 }
 0x31f   :  { %1904 = vmatpush3.bf16.msra.mxu0 %v1979_v57 }
 0x320   :  { %1905 = vmatprep.subr.bf16.mxu0 %v1980_v17 }
 0x321   :  { %1876 = vmatpush3.bf16.msra.mxu1 %v1985_v0 }
 0x322   :  { %1877 = vmatprep.subr.bf16.mxu1 %v1986_v10 }
 0x323   :  { %1906 = vmatpush3.bf16.msra.mxu0 %v1980_v17 }
 0x324   :  { %1907 = vmatprep.subr.bf16.mxu0 %v1981_v19 }
 0x325   :  { %1878 = vmatpush3.bf16.msra.mxu1 %v1986_v10 }
 0x326   :  { %1879 = vmatprep.subr.bf16.mxu1 %v1987_v11 }
 0x327   :  { %1908 = vmatpush3.bf16.msra.mxu0 %v1981_v19 }
 0x328   :  { %1909 = vmatprep.subr.bf16.mxu0 %v1982_v16 }
 0x329   :  { %1880 = vmatpush3.bf16.msra.mxu1 %v1987_v11 }
 0x32a   :  { %1881 = vmatprep.subr.bf16.mxu1 %v1988_v54 }
 0x32b   :  { %1910 = vmatpush3.bf16.msra.mxu0 %v1982_v16 }
 0x32c   :  { %1911 = vmatprep.subr.bf16.mxu0 %v1983_v21 }
 0x32d   :  { %1882 = vmatpush3.bf16.msra.mxu1 %v1988_v54 }
 0x32f   :  { %1912 = vmatpush3.bf16.msra.mxu0 %v1983_v21 }
 0x332   :  { %1914 = vmatmul.mubr.bf16.vlgmr.msra.gmra.mxu0 %v2372_v25  ;;  %v1989_v25 = vld [vmem:[#allocation14 + $0x10] sm:$0xff]  }
 0x333   :  { %1917 = vmatprep.mubr.bf16.mxu0 %v2360_v23  ;;  %1883 = vmatprep.subr.bf16.mxu1 %v1989_v25  ;;  %v1990_v23 = vld [vmem:[#allocation14 + $0x8] sm:$0xff]  }
 0x334   :  { %1884 = vmatpush3.bf16.msra.mxu1 %v1989_v25 }
 0x335   :  { %1885 = vmatprep.subr.bf16.mxu1 %v1990_v23 }
 0x338   :  { %1886 = vmatpush3.bf16.msra.mxu1 %v1990_v23 }
 0x33a   :  { %1918 = vmatmul.mubr.bf16.gmra.mxu0 %v2352_v20  ;;  %v1991_v20 = vld [vmem:[#allocation14] sm:$0xff]  }
 0x33b   :  { %1887 = vmatprep.subr.bf16.mxu1 %v1991_v20 }
 0x33c   :  { %1888 = vmatpush3.bf16.msra.mxu1 %v1991_v20 }
 0x3d1   :  { %v1867_v13 = vpop.f32.mrf.mxu0 }
 0x3d2   :  { %v2513_v14 = vadd.f32 %v1867_v13, %v1578_v12 }
 0x3d3   :  { %v1085_v18 = vpop.f32.mrf.mxu0 }
 0x3d4   :  { %v1118_v29 = vmul.f32 %v2513_v14, %v2513_v14  ;;  %v2517_v30 = vadd.f32 %v1578_v12, %v1085_v18 }
 0x3d5   :  { %v1868_v31 = vpop.f32.mrf.mxu0 }
 0x3d6   :  { %v1126_v32 = vmul.f32 %v1118_v29, %v2513_v14  ;;  %v1116_v33 = vmul.f32 %v2517_v30, %v2517_v30  ;;  %v2522_v34 = vadd.f32 %v1868_v31, %v1578_v12 }
 0x3d7   :  { %v1088_v35 = vpop.f32.mrf.mxu0 }
 0x3d8   :  { %v1134_v37 = vmul.f32 0.044715, %v1126_v32  ;;  %v1124_v38 = vmul.f32 %v1116_v33, %v2517_v30  ;;  %v1119_v40 = vmul.f32 %v2522_v34, %v2522_v34  ;;  %v2527_v41 = vadd.f32 %v1578_v12, %v1088_v35 }
 0x3da   :  { %v1142_v42 = vadd.f32 %v1134_v37, %v2513_v14  ;;  %v1132_v43 = vmul.f32 0.044715, %v1124_v38  ;;  %v1127_v44 = vmul.f32 %v1119_v40, %v2522_v34  ;;  %v1117_v45 = vmul.f32 %v2527_v41, %v2527_v41  ;;  %v1871_v46 = vpop.f32.mrf.mxu0 }
 0x3db   :  { %v2533_v48 = vadd.f32 %v1871_v46, %v1578_v12 }
 0x3dc   :  { %v1150_v50 = vmul.f32 0.7978846, %v1142_v42  ;;  %v1140_v49 = vadd.f32 %v1132_v43, %v2517_v30  ;;  %v1135_v52 = vmul.f32 0.044715, %v1127_v44  ;;  %v1125_v55 = vmul.f32 %v1117_v45, %v2527_v41  ;;  %v1101_v56 = vpop.f32.mrf.mxu0 }
 0x3dd   :  { %v1122_v2 = vmul.f32 %v2533_v48, %v2533_v48  ;;  %v2539_v60 = vadd.f32 %v1578_v12, %v1101_v56 }
 0x3de   :  { %2008 = vtanh.f32 %v1150_v50  ;;  %v1148_v59 = vmul.f32 0.7978846, %v1140_v49  ;;  %v1143_v15 = vadd.f32 %v1135_v52, %v2522_v34  ;;  %v1133_v61 = vmul.f32 0.044715, %v1125_v55  ;;  %v1872_v22 = vpop.f32.mrf.mxu0 }
 0x3df   :  { %v1130_v62 = vmul.f32 %v1122_v2, %v2533_v48  ;;  %v1120_v63 = vmul.f32 %v2539_v60, %v2539_v60  ;;  %v2545_v27 = vadd.f32 %v1872_v22, %v1578_v12 }
 0x3e0   :  { %2010 = vtanh.f32 %v1148_v59  ;;  %v1151_v26 = vmul.f32 0.7978846, %v1143_v15  ;;  %v1141_v1 = vadd.f32 %v1133_v61, %v2527_v41  ;;  %v1104_v24 = vpop.f32.mrf.mxu0 }
 0x3e1   :  { %v1138_v3 = vmul.f32 0.044715, %v1130_v62  ;;  %v1128_v4 = vmul.f32 %v1120_v63, %v2539_v60  ;;  %v1123_v5 = vmul.f32 %v2545_v27, %v2545_v27  ;;  %v1105_v39 = vadd.f32 %v1578_v12, %v1104_v24 }
 0x3e2   :  { %2012 = vtanh.f32 %v1151_v26  ;;  %v1149_v36 = vmul.f32 0.7978846, %v1141_v1 }
 0x3e3   :  { %v1146_v57 = vadd.f32 %v1138_v3, %v2533_v48  ;;  %v1136_v17 = vmul.f32 0.044715, %v1128_v4  ;;  %v1131_v19 = vmul.f32 %v1123_v5, %v2545_v27  ;;  %v1121_v16 = vmul.f32 %v1105_v39, %v1105_v39 }
 0x3e4   :  { %2014 = vtanh.f32 %v1149_v36 }
 0x3e5   :  { %v1154_v21 = vmul.f32 0.7978846, %v1146_v57  ;;  %v1144_v28 = vadd.f32 %v1136_v17, %v2539_v60  ;;  %v1139_v0 = vmul.f32 0.044715, %v1131_v19  ;;  %v1129_v10 = vmul.f32 %v1121_v16, %v1105_v39 }
 0x3e7   :  { %2016 = vtanh.f32 %v1154_v21  ;;  %v1152_v11 = vmul.f32 0.7978846, %v1144_v28  ;;  %v1147_v54 = vadd.f32 %v1139_v0, %v2545_v27  ;;  %v1137_v25 = vmul.f32 0.044715, %v1129_v10 }
 0x3e9   :  { %2018 = vtanh.f32 %v1152_v11  ;;  %v1155_v23 = vmul.f32 0.7978846, %v1147_v54  ;;  %v1145_v20 = vadd.f32 %v1137_v25, %v1105_v39 }
 0x3eb   :  { %v2009_v12 = vpop.eup %2008  ;;  %2020 = vtanh.f32 %v1155_v23  ;;  %v1153_v13 = vmul.f32 0.7978846, %v1145_v20 }
 0x3ec   :  { %v1166_v29 = vadd.f32 1.0, %v2009_v12 }
 0x3ed   :  { %v2011_v18 = vpop.eup %2010  ;;  %2022 = vtanh.f32 %v1153_v13 }
 0x3ee   :  { %v1164_v31 = vadd.f32 1.0, %v2011_v18  ;;  %v1174_v38 = vmul.f32 0.5, %v1166_v29 }
 0x3ef   :  { %v2013_v32 = vpop.eup %2012 }
 0x3f0   :  { %v1167_v33 = vadd.f32 1.0, %v2013_v32  ;;  %v1172_v35 = vmul.f32 0.5, %v1164_v31  ;;  %v1182_v50 = vmul.f32 %v1174_v38, %v2513_v14 }
 0x3f1   :  { %v2015_v37 = vpop.eup %2014 }
 0x3f2   :  { %v1175_v40 = vmul.f32 0.5, %v1167_v33  ;;  %v1165_v42 = vadd.f32 1.0, %v2015_v37  ;;  %v1180_v46 = vmul.f32 %v1172_v35, %v2517_v30  ;;  %v1190_v22 = vadd.f32 %v1182_v50, %v2479_v7  ;;  %v1915_v19 = vpop.f32.mrf.mxu0 }
 0x3f4   :  { %v2017_v43 = vpop.eup %2016  ;;  %v1183_v44 = vmul.f32 %v1175_v40, %v2522_v34  ;;  %v1173_v45 = vmul.f32 0.5, %v1165_v42  ;;  %v1188_v15 = vadd.f32 %v1180_v46, %v2473_v51  ;;  %v1427_v16 = vpop.f32.mrf.mxu0 }
 0x3f5   :  { %v1170_v55 = vadd.f32 1.0, %v2017_v43 }
 0x3f6   :  { %v2019_v49 = vpop.eup %2018  ;;  %v1181_v52 = vmul.f32 %v1173_v45, %v2527_v41  ;;  %v1191_v56 = vadd.f32 %v1183_v44, %v2470_v53 }
 0x3f7   :  { %v1168_v2 = vadd.f32 1.0, %v2019_v49  ;;  %v1178_v26 = vmul.f32 0.5, %v1170_v55 }
 0x3f8   :  { %v2021_v59 = vpop.eup %2020  ;;  %v1189_v61 = vadd.f32 %v1181_v52, %v2476_v58  ;;  %v1213_v14 = vpack.c.bf16 %v1191_v56, %v1190_v22 }
 0x3f9   :  { %v1176_v34 = vmul.f32 0.5, %v1168_v2  ;;  %v1171_v62 = vadd.f32 1.0, %v2021_v59  ;;  %v1186_v51 = vmul.f32 %v1178_v26, %v2533_v48 }
 0x3fa   :  { %v2023_v63 = vpop.eup %2022  ;;  %v1212_v30 = vpack.c.bf16 %v1189_v61, %v1188_v15 }
 0x3fb   :  { %v1169_v1 = vadd.f32 1.0, %v2023_v63  ;;  %v1179_v24 = vmul.f32 0.5, %v1171_v62  ;;  %v1184_v53 = vmul.f32 %v1176_v34, %v2539_v60  ;;  %v1194_v36 = vadd.f32 %v1186_v51, %v2500_v47  ;;  %v1916_v60 = vpop.f32.mrf.mxu0 }
 0x3fc   :  { %1889 = vmatprep.mubr.bf16.mxu1 %v1212_v30 }
 0x3fd   :  { %1890 = vmatmul.mubr.bf16.vlgmr.msra.gmra.mxu1 %v1213_v14  ;;  %v1177_v41 = vmul.f32 0.5, %v1169_v1  ;;  %v1187_v3 = vmul.f32 %v1179_v24, %v2545_v27  ;;  %v1192_v4 = vadd.f32 %v1184_v53, %v2494_v8  ;;  %v1430_v21 = vpop.f32.mrf.mxu0 }
 0x3ff   :  { %v1185_v58 = vmul.f32 %v1177_v41, %v1105_v39  ;;  %v1195_v7 = vadd.f32 %v1187_v3, %v2491_v6  ;;  %v1919_v48 = vpop.f32.mrf.mxu0  ;;  %v1459_v6 = vstv %s2592_s13  ;;  %s2203_s13 = smov [#allocation15]  }
 0x400   :  { %s1513_s29 = sshll.u32 %s2203_s13, 4  ;;  %s1514_s29 = int_to_ptr.vmem [resolvable:$true] %s1513_s29 }
 0x401   :  { %v1193_v5 = vadd.f32 %v1185_v58, %v2497_v9  ;;  %v1215_v17 = vpack.c.bf16 %v1195_v7, %v1194_v36  ;;  %v1443_v10 = vpop.f32.mrf.mxu0  ;;  %s2164_s9 = scalar_lea.vmem %s1514_s29, 512  ;;  %p2169_p8 = scmp.lt.s32.totalorder %s1514_s29, %s1514_s29 }
 0x402   :  { %p2165_p7 = scmp.ne.s32.totalorder %s1514_s29, %s2164_s9  ;;  %p2170_p9 = scmp.lt.s32.totalorder %s2164_s9, %s2164_s9 }
 0x403   :  { %v1214_v57 = vpack.c.bf16 %v1193_v5, %v1192_v4  ;;  %v1920_v18 = vpop.f32.mrf.mxu0 }
 0x404   :  { %p2171_p10 = por %p2170_p9, %p2169_p8 }
 0x405   :  { %1893 = vmatprep.mubr.bf16.mxu1 %v1214_v57  ;;  %v1446_v38 = vpop.f32.mrf.mxu0 }
 0x406   :  { %1894 = vmatmul.mubr.bf16.gmra.mxu1 %v1215_v17  ;;  %p2172_p11 = pnand %p2171_p10, %p2165_p7 }
 0x4bd   :  { %v1891_v27 = vpop.f32.mrf.mxu1 }
 0x4be   :  { %v1436_v39 = vadd.f32 %v1915_v19, %v1891_v27 }
 0x4bf   :  { %v1314_v28 = vpop.f32.mrf.mxu1 }
 0x4c0   :  { %v1428_v9 = vadd.f32 %v1427_v16, %v1314_v28  ;;  %v1462_v11 = vadd.f32 %v1459_v6, %v1436_v39 }
 0x4c1   :  { %v1892_v8 = vpop.f32.mrf.mxu1 }
 0x4c2   :  { %v1439_v0 = vadd.f32 %v1916_v60, %v1892_v8  ;;  %v1460_v23 = vadd.f32 %v1459_v6, %v1428_v9 }
 0x4c3   :  { %v1317_v47 = vpop.f32.mrf.mxu1 }
 0x4c4   :  { %v1463_v54 = vadd.f32 %v1459_v6, %v1439_v0  ;;  %v1431_v25 = vadd.f32 %v1430_v21, %v1317_v47 }
 0x4c6   :  { %v1627_v20 = vpack.c.bf16 %v1463_v54, %v1462_v11  ;;  %v1461_v12 = vadd.f32 %v1459_v6, %v1431_v25  ;;  %v1895_v13 = vpop.f32.mrf.mxu1 }
 0x4c7   :  { %v1452_v32 = vadd.f32 %v1919_v48, %v1895_v13 }
 0x4c8   :  { %1639 = vst [vmem:[#allocation15 + $0x8] sm:$0xff] %v1627_v20   ;;  %v1622_v29 = vpack.c.bf16 %v1461_v12, %v1460_v23  ;;  %v1330_v31 = vpop.f32.mrf.mxu1 }
 0x4c9   :  { %v1444_v35 = vadd.f32 %v1443_v10, %v1330_v31  ;;  %v1466_v42 = vadd.f32 %v1459_v6, %v1452_v32 }
 0x4ca   :  { %1623 = vst [vmem:[#allocation15] sm:$0xff] %v1622_v29   ;;  %v1896_v33 = vpop.f32.mrf.mxu1 }
 0x4cb   :  { %v1455_v37 = vadd.f32 %v1920_v18, %v1896_v33  ;;  %v1464_v45 = vadd.f32 %v1459_v6, %v1444_v35 }
 0x4cc   :  { %v1333_v40 = vpop.f32.mrf.mxu1 }
 0x4cd   :  { %v1467_v43 = vadd.f32 %v1459_v6, %v1455_v37  ;;  %v1447_v44 = vadd.f32 %v1446_v38, %v1333_v40 }
 0x4cf   :  { %v1637_v46 = vpack.c.bf16 %v1467_v43, %v1466_v42  ;;  %v1465_v50 = vadd.f32 %v1459_v6, %v1447_v44 }
 0x4d1   :  { %1641 = vst [vmem:[#allocation15 + $0x18] sm:$0xff] %v1637_v46   ;;  %v1632_v49 = vpack.c.bf16 %v1465_v50, %v1464_v45 }
 0x4d3   :  { %1640 = vst [vmem:[#allocation15 + $0x10] sm:$0xff] %v1632_v49  }
 0x4d4   :  { %2175 = shalt.err (!%p2172_p11)
}
 0x4d5   :  { %1519 = dma.vmem_to_hbm [thread:$0]  %s1514_s29, 512, %s2593_s14, [#allocation5], %s2196_s18, %s2196_s18, %s2197_s19  }
 0x4d6   :  { %2192 = dma.done.wait [#allocation5], 512  }
 0x4d7   :  { %2193 = vsyncadd [#allocation5], 4294966784 }
 0x4d8   :  { %1523 = vsyncpa [#allocation4], 1 }
 0x4d9   :  { %1524 = vsyncpa [#allocation7], 1 }
 0x4da   :  { %1525 = vsyncpa [#allocation10], 1 }
 0x4db   :  { %1526 = vsyncpa [#allocation13], 1 }
 0x4dc   :  { %1527 = vsyncpa [#allocation5], 1 }

</bundles_post_ra>
